<compile_context>
chip_gen: v6e
topology: v6e:2x2x1
jax: 0.10.0
libtpu: 0.0.40
codegen_flags: <defaults>
</compile_context>

<pallas_src>
import functools

import jax
import jax.numpy as jnp
from jax.experimental import pallas as pl
from jax.experimental.pallas import tpu as pltpu


def _round_up(n, m):
    return ((n + m - 1) // m) * m


def dis_embed_att_kernel(x_ref, w1_ref, b1_ref, w2_ref, b2_ref, o_ref):
    # x:  [BM, K]            (f32, streamed)
    # w1: [K, nhF_pad]       (f32, resident), b1: [1, nhF_pad] (f32)
    # w2: [nhF_pad, C_dim]   (f32, resident), b2: [1, C_dim]   (f32)
    x = x_ref[...]
    # First matmul on the MXU, f32 accumulation.
    h = jnp.dot(x, w1_ref[...], preferred_element_type=jnp.float32) + b1_ref[...]
    # LeakyReLU(0.2) on the VPU (matches PyTorch: value 0 at h == 0).
    h = jnp.where(h > 0, h, 0.2 * h)
    # Second matmul, f32 accumulation, bias add.
    out = jnp.dot(h, w2_ref[...], preferred_element_type=jnp.float32) + b2_ref[...]
    o_ref[...] = out.astype(o_ref.dtype)


@functools.partial(jax.jit, static_argnames=("block_m",))
def dis_embed_att(x, w1, b1, w2, b2, *, block_m=8192):
    """Forward pass of Dis_Embed_Att.

    x:  [B, X_dim + C_dim]
    w1: [X_dim + C_dim, nhF], b1: [nhF] or [1, nhF]
    w2: [nhF, C_dim],         b2: [C_dim] or [1, C_dim]
    """
    B, K = x.shape
    nhF = w1.shape[1]
    C_dim = w2.shape[1]

    # --- pad hidden dim to a multiple of 128 (lane-dense h, full MXU N) ---
    nhF_pad = _round_up(nhF, 128)
    w1 = w1.astype(jnp.float32)
    w2 = w2.astype(jnp.float32)
    b1 = b1.reshape(1, nhF).astype(jnp.float32)
    b2 = b2.reshape(1, C_dim).astype(jnp.float32)
    if nhF_pad != nhF:
        w1 = jnp.pad(w1, ((0, 0), (0, nhF_pad - nhF)))
        b1 = jnp.pad(b1, ((0, 0), (0, nhF_pad - nhF)))
        w2 = jnp.pad(w2, ((0, nhF_pad - nhF), (0, 0)))

    x = x.astype(jnp.float32)  # no-op for f32 callers; no separate HBM pass

    # --- batch tiling ---
    # Big tiles amortize the ~0.35 us per-grid-step overhead; cap so the grid
    # keeps >= 8 steps at huge B (megacore sharding + DMA/compute overlap).
    bm = min(block_m, _round_up(B, 16))
    if B >= 8 * 1024:
        bm = min(bm, max(1024, _round_up(pl.cdiv(B, 8), 16)))
    bm = max(bm, 16)
    grid = (pl.cdiv(B, bm),)

    out = pl.pallas_call(
        dis_embed_att_kernel,
        out_shape=jax.ShapeDtypeStruct((B, C_dim), jnp.float32),
        grid=grid,
        in_specs=[
            pl.BlockSpec((bm, K), lambda i: (i, 0)),           # x: streamed
            pl.BlockSpec((K, nhF_pad), lambda i: (0, 0)),      # w1: resident
            pl.BlockSpec((1, nhF_pad), lambda i: (0, 0)),      # b1: resident
            pl.BlockSpec((nhF_pad, C_dim), lambda i: (0, 0)),  # w2: resident
            pl.BlockSpec((1, C_dim), lambda i: (0, 0)),        # b2: resident
        ],
        out_specs=pl.BlockSpec((bm, C_dim), lambda i: (i, 0)),
        compiler_params=pltpu.CompilerParams(
            # Batch axis is embarrassingly parallel -> megacore on v7x.
            dimension_semantics=("parallel",),
        ),
    )(x, w1, b1, w2, b2)
    return out


def init_params(key, X_dim, C_dim, nhF, dtype=jnp.float32):
    # weights_init: Linear weights ~ N(0, 0.02), biases = 0
    k1, k2 = jax.random.split(key)
    w1 = (0.02 * jax.random.normal(k1, (X_dim + C_dim, nhF))).astype(dtype)
    b1 = jnp.zeros((1, nhF), dtype=dtype)
    w2 = (0.02 * jax.random.normal(k2, (nhF, C_dim))).astype(dtype)
    b2 = jnp.zeros((1, C_dim), dtype=dtype)
    return w1, b1, w2, b2


def reference(x, w1, b1, w2, b2):
    h = x @ w1 + b1.reshape(1, -1)
    h = jnp.where(h > 0, h, 0.2 * h)
    return h @ w2 + b2.reshape(1, -1)


if __name__ == "__main__":
    X_dim, C_dim, nhF = 32, 16, 64

    key = jax.random.PRNGKey(0)
    k_x, k_p, k_x2 = jax.random.split(key, 3)
    w1, b1, w2, b2 = init_params(k_p, X_dim, C_dim, nhF)

    # Small demo shape (single-step grid).
    batch = 8
    x = jax.random.normal(k_x, (batch, X_dim + C_dim), dtype=jnp.float32)
    out = jax.block_until_ready(dis_embed_att(x, w1, b1, w2, b2))
    ref = reference(x, w1, b1, w2, b2)
    assert out.shape == (batch, C_dim)
    assert jnp.allclose(out, ref, atol=1e-3, rtol=1e-3), float(
        jnp.max(jnp.abs(out - ref)))

    # Ragged batch with small block_m to exercise the multi-step pipelined grid.
    batch2 = 1037
    x2 = jax.random.normal(k_x2, (batch2, X_dim + C_dim), dtype=jnp.float32)
    out2 = jax.block_until_ready(dis_embed_att(x2, w1, b1, w2, b2, block_m=256))
    ref2 = reference(x2, w1, b1, w2, b2)
    assert out2.shape == (batch2, C_dim)
    assert jnp.allclose(out2, ref2, atol=1e-3, rtol=1e-3), float(
        jnp.max(jnp.abs(out2 - ref2)))

    print("KERNEL_OK")
</pallas_src>

<mosaic_0001>
module attributes {stable_mosaic.version = 11 : i64} {
  func.func @dis_embed_att_kernel(%arg0: i32, %arg1: memref<16x48xf32, #tpu.memory_space<vmem>>, %arg2: memref<48x128xf32, #tpu.memory_space<vmem>>, %arg3: memref<1x128xf32, #tpu.memory_space<vmem>>, %arg4: memref<128x16xf32, #tpu.memory_space<vmem>>, %arg5: memref<1x16xf32, #tpu.memory_space<vmem>>, %arg6: memref<16x16xf32, #tpu.memory_space<vmem>>) attributes {dimension_semantics = [#tpu.dimension_semantics<parallel>], iteration_bounds = array<i64: 1>, scalar_prefetch = 0 : i64, scratch_operands = 0 : i64, tpu.core_type = #tpu.core_type<tc>, window_params = [{transform_indices = @transform_0, window_bounds = array<i64: 16, 48>}, {pipeline_mode = #tpu.pipeline_mode<synchronous>, transform_indices = @transform_1, window_bounds = array<i64: 48, 128>}, {pipeline_mode = #tpu.pipeline_mode<synchronous>, transform_indices = @transform_2, window_bounds = array<i64: 1, 128>}, {pipeline_mode = #tpu.pipeline_mode<synchronous>, transform_indices = @transform_3, window_bounds = array<i64: 128, 16>}, {pipeline_mode = #tpu.pipeline_mode<synchronous>, transform_indices = @transform_4, window_bounds = array<i64: 1, 16>}, {transform_indices = @transform_5, window_bounds = array<i64: 16, 16>}]} {
    %c0 = arith.constant 0 : index
    %c0_0 = arith.constant 0 : index
    %0 = vector.load %arg1[%c0, %c0_0] : memref<16x48xf32, #tpu.memory_space<vmem>>, vector<16x48xf32>
    %c0_1 = arith.constant 0 : index
    %c0_2 = arith.constant 0 : index
    %1 = vector.load %arg2[%c0_1, %c0_2] : memref<48x128xf32, #tpu.memory_space<vmem>>, vector<48x128xf32>
    %cst = arith.constant dense<0.000000e+00> : vector<16x128xf32>
    %2 = tpu.matmul %0, %1, %cst {dimension_numbers = #tpu.dot_dimension_numbers<[1], [0], [0], [1], [0, 0, 1, 1], [], []>} : vector<16x48xf32>, vector<48x128xf32>, vector<16x128xf32> -> vector<16x128xf32>
    %c0_3 = arith.constant 0 : index
    %c0_4 = arith.constant 0 : index
    %3 = vector.load %arg3[%c0_3, %c0_4] : memref<1x128xf32, #tpu.memory_space<vmem>>, vector<1x128xf32>
    %4 = vector.broadcast %3 : vector<1x128xf32> to vector<16x128xf32>
    %5 = arith.addf %2, %4 : vector<16x128xf32>
    %cst_5 = arith.constant 0.000000e+00 : f32
    %6 = vector.broadcast %cst_5 : f32 to vector<16x128xf32>
    %7 = arith.cmpf ogt, %5, %6 : vector<16x128xf32>
    %cst_6 = arith.constant 2.000000e-01 : f32
    %8 = vector.broadcast %cst_6 : f32 to vector<16x128xf32>
    %9 = arith.mulf %8, %5 : vector<16x128xf32>
    %10 = arith.select %7, %5, %9 : vector<16x128xi1>, vector<16x128xf32>
    %c0_7 = arith.constant 0 : index
    %c0_8 = arith.constant 0 : index
    %11 = vector.load %arg4[%c0_7, %c0_8] : memref<128x16xf32, #tpu.memory_space<vmem>>, vector<128x16xf32>
    %cst_9 = arith.constant dense<0.000000e+00> : vector<16x16xf32>
    %12 = tpu.matmul %10, %11, %cst_9 {dimension_numbers = #tpu.dot_dimension_numbers<[1], [0], [0], [1], [0, 0, 1, 1], [], []>} : vector<16x128xf32>, vector<128x16xf32>, vector<16x16xf32> -> vector<16x16xf32>
    %c0_10 = arith.constant 0 : index
    %c0_11 = arith.constant 0 : index
    %13 = vector.load %arg5[%c0_10, %c0_11] : memref<1x16xf32, #tpu.memory_space<vmem>>, vector<1x16xf32>
    %14 = vector.broadcast %13 : vector<1x16xf32> to vector<16x16xf32>
    %15 = arith.addf %12, %14 : vector<16x16xf32>
    %c0_12 = arith.constant 0 : index
    %c0_13 = arith.constant 0 : index
    %16 = vector.load %arg6[%c0_12, %c0_13] : memref<16x16xf32, #tpu.memory_space<vmem>>, vector<16x16xf32>
    tpu.vector_store %arg6[%c0_12, %c0_13], %15 {strides = array<i32>} : memref<16x16xf32, #tpu.memory_space<vmem>>, vector<16x16xf32>,
    return
  }
  func.func @transform_0(%arg0: i32) -> (i32, i32) {
    %c0_i32 = arith.constant 0 : i32
    %c0_i32_0 = arith.constant 0 : i32
    return %arg0, %c0_i32 : i32, i32
  }
  func.func @transform_1(%arg0: i32) -> (i32, i32) {
    %c0_i32 = arith.constant 0 : i32
    %c0_i32_0 = arith.constant 0 : i32
    %c0_i32_1 = arith.constant 0 : i32
    return %c0_i32, %c0_i32_0 : i32, i32
  }
  func.func @transform_2(%arg0: i32) -> (i32, i32) {
    %c0_i32 = arith.constant 0 : i32
    %c0_i32_0 = arith.constant 0 : i32
    %c0_i32_1 = arith.constant 0 : i32
    return %c0_i32, %c0_i32_0 : i32, i32
  }
  func.func @transform_3(%arg0: i32) -> (i32, i32) {
    %c0_i32 = arith.constant 0 : i32
    %c0_i32_0 = arith.constant 0 : i32
    %c0_i32_1 = arith.constant 0 : i32
    return %c0_i32, %c0_i32_0 : i32, i32
  }
  func.func @transform_4(%arg0: i32) -> (i32, i32) {
    %c0_i32 = arith.constant 0 : i32
    %c0_i32_0 = arith.constant 0 : i32
    %c0_i32_1 = arith.constant 0 : i32
    return %c0_i32, %c0_i32_0 : i32, i32
  }
  func.func @transform_5(%arg0: i32) -> (i32, i32) {
    %c0_i32 = arith.constant 0 : i32
    %c0_i32_0 = arith.constant 0 : i32
    return %arg0, %c0_i32 : i32, i32
  }
}

</mosaic_0001>

<bundles_post_ra>
// kernel: dis_embed_att.1
= control target key start
LH: loop header
LB: loop body
LE: loop exit
PB: predicated region body
PF: predicated region fallthrough
CT: control target
= control target key end

     0   :  { %10 = vsyncpa [#allocation3], 0  ;;  %vm36_vm0 = vcmask 392192   ;;  %vm222_vm3 = vcmask 130048   ;;  %s462_s0 = inlined_call_operand.vmem [shape: f32[8,48], index: 0, kind: input, shape index: {}]   ;;  %s463_s1 = inlined_call_operand.vmem [shape: f32[48,128], index: 1, kind: input, shape index: {}]   ;;  %s464_s2 = inlined_call_operand.vmem [shape: f32[1,128], index: 2, kind: input, shape index: {}]   ;;  %s465_s3 = inlined_call_operand.vmem [shape: f32[128,16], index: 3, kind: input, shape index: {}]   ;;  %s466_s4 = inlined_call_operand.vmem [shape: f32[1,16], index: 4, kind: input, shape index: {}]   ;;  %s467_s5 = inlined_call_operand.hbm [shape: f32[8,16], index: 5, kind: output, shape index: {}]  }
   0x1   :  { %v28_v0 = vld [vmem:[%s463_s1 + $0x28] sm:$0xff]  ;;  %v27_v1 = vld [vmem:[%s463_s1 + $0x20] sm:$0xff]  ;;  %v26_v2 = vld [vmem:[%s463_s1 + $0x18] sm:$0xff] }
   0x2   :  { %271 = vmatprep.subr.mxu0 %v28_v0  ;;  %v21_v3 = vld [vmem:[%s462_s0] sm:$0xff]  ;;  %v139_v4 = vld [vmem:[%s465_s3 + $0x78] sm:$0xff]  ;;  %v138_v5 = vld [vmem:[%s465_s3 + $0x70] sm:$0xff] }
   0x3   :  { %272 = vmatpush3.msra.mxu0 %v28_v0  ;;  %283 = vmatprep.mubr.msk.f32.mxu0 %vm36_vm0, %v21_v3  ;;  %v25_v6 = vld [vmem:[%s463_s1 + $0x10] sm:$0xff]  ;;  %v137_v7 = vld [vmem:[%s465_s3 + $0x68] sm:$0xff]  ;;  %v136_v9 = vld [vmem:[%s465_s3 + $0x60] sm:$0xff] }
   0x4   :  { %273 = vmatprep.subr.mxu0 %v27_v1  ;;  %286 = vmatprep.subr.mxu1 %v139_v4  ;;  %v24_v8 = vld [vmem:[%s463_s1 + $0x8] sm:$0xff]  ;;  %v23_v10 = vld [vmem:[%s463_s1] sm:$0xff]  ;;  %v135_v11 = vld [vmem:[%s465_s3 + $0x58] sm:$0xff] }
   0x5   :  { %274 = vmatpush3.msra.mxu0 %v27_v1  ;;  %287 = vmatpush3.msra.mxu1 %v139_v4  ;;  %v22_v12 = vld [vmem:[%s462_s0 + $0x8] sm:$0xff]  ;;  %v134_v13 = vld [vmem:[%s465_s3 + $0x50] sm:$0xff]  ;;  %v132_v15 = vld [vmem:[%s465_s3 + $0x40] sm:$0xff] }
   0x6   :  { %275 = vmatprep.subr.mxu0 %v26_v2  ;;  %288 = vmatprep.subr.mxu1 %v138_v5  ;;  %v133_v14 = vld [vmem:[%s465_s3 + $0x48] sm:$0xff]  ;;  %v131_v16 = vld [vmem:[%s465_s3 + $0x38] sm:$0xff]  ;;  %v130_v17 = vld [vmem:[%s465_s3 + $0x30] sm:$0xff] }
   0x7   :  { %276 = vmatpush3.msra.mxu0 %v26_v2  ;;  %289 = vmatpush3.msra.mxu1 %v138_v5  ;;  %v129_v18 = vld [vmem:[%s465_s3 + $0x28] sm:$0xff]  ;;  %v128_v19 = vld [vmem:[%s465_s3 + $0x20] sm:$0xff]  ;;  %v127_v20 = vld [vmem:[%s465_s3 + $0x18] sm:$0xff] }
   0x8   :  { %277 = vmatprep.subr.mxu0 %v25_v6  ;;  %290 = vmatprep.subr.mxu1 %v137_v7  ;;  %v126_v21 = vld [vmem:[%s465_s3 + $0x10] sm:$0xff]  ;;  %v125_v22 = vld [vmem:[%s465_s3 + $0x8] sm:$0xff]  ;;  %v124_v23 = vld [vmem:[%s465_s3] sm:$0xff] }
   0x9   :  { %278 = vmatpush3.msra.mxu0 %v25_v6  ;;  %291 = vmatpush3.msra.mxu1 %v137_v7  ;;  %v241_v24 = vld [vmem:[%s464_s2] ss:$0 sm:$0xff] }
   0xa   :  { %279 = vmatprep.subr.mxu0 %v24_v8  ;;  %292 = vmatprep.subr.mxu1 %v136_v9  ;;  %v244_v33 = vld [vmem:[%s466_s4] ss:$0 sm:$0xff] }
   0xb   :  { %280 = vmatpush3.msra.mxu0 %v24_v8  ;;  %293 = vmatpush3.msra.mxu1 %v136_v9 }
   0xc   :  { %281 = vmatprep.subr.mxu0 %v23_v10  ;;  %294 = vmatprep.subr.mxu1 %v135_v11 }
   0xd   :  { %282 = vmatpush3.msra.mxu0 %v23_v10  ;;  %295 = vmatpush3.msra.mxu1 %v135_v11 }
   0xe   :  { %284 = vmatmul.mubr.msk.f32.vlgmr.msra.gmra.mxu0 %vm36_vm0, %v22_v12  ;;  %296 = vmatprep.subr.mxu1 %v134_v13 }
   0xf   :  { %297 = vmatpush3.msra.mxu1 %v134_v13 }
  0x10   :  { %298 = vmatprep.subr.mxu1 %v133_v14 }
  0x11   :  { %299 = vmatpush3.msra.mxu1 %v133_v14 }
  0x12   :  { %300 = vmatprep.subr.mxu1 %v132_v15 }
  0x13   :  { %301 = vmatpush3.msra.mxu1 %v132_v15 }
  0x14   :  { %302 = vmatprep.subr.mxu1 %v131_v16 }
  0x15   :  { %303 = vmatpush3.msra.mxu1 %v131_v16 }
  0x16   :  { %304 = vmatprep.subr.mxu1 %v130_v17 }
  0x17   :  { %305 = vmatpush3.msra.mxu1 %v130_v17 }
  0x18   :  { %306 = vmatprep.subr.mxu1 %v129_v18 }
  0x19   :  { %307 = vmatpush3.msra.mxu1 %v129_v18 }
  0x1a   :  { %308 = vmatprep.subr.mxu1 %v128_v19 }
  0x1b   :  { %309 = vmatpush3.msra.mxu1 %v128_v19 }
  0x1c   :  { %310 = vmatprep.subr.mxu1 %v127_v20 }
  0x1d   :  { %311 = vmatpush3.msra.mxu1 %v127_v20 }
  0x1e   :  { %312 = vmatprep.subr.mxu1 %v126_v21 }
  0x1f   :  { %313 = vmatpush3.msra.mxu1 %v126_v21 }
  0x20   :  { %314 = vmatprep.subr.mxu1 %v125_v22 }
  0x21   :  { %315 = vmatpush3.msra.mxu1 %v125_v22 }
  0x22   :  { %316 = vmatprep.subr.mxu1 %v124_v23 }
  0x23   :  { %317 = vmatpush3.msra.mxu1 %v124_v23 }
  0xce   :  { %v285_v25 = vpop.f32.mrf.mxu0 }
  0xcf   :  { %v115_v26 = vadd.f32 %v285_v25, %v241_v24 }
  0xd0   :  { %v109_v27 = vpop.f32.mrf.mxu0 }
  0xd1   :  { %v110_v28 = vadd.f32 %v241_v24, %v109_v27  ;;  %v121_v29 = vmul.f32 0.2, %v115_v26  ;;  %vm119_vm2 = vcmp.gt.f32.partialorder %v115_v26, 0.0 }
  0xd3   :  { %vm118_vm1 = vcmp.gt.f32.partialorder %v110_v28, 0.0  ;;  %v120_v30 = vmul.f32 0.2, %v110_v28  ;;  %v123_v32 = vsel %vm119_vm2, %v115_v26, %v121_v29 }
  0xd5   :  { %v122_v31 = vsel %vm118_vm1, %v110_v28, %v120_v30 }
  0xd6   :  { %318 = vmatprep.mubr.f32.mxu1 %v122_v31 }
  0xd7   :  { %319 = vmatmul.mubr.f32.vlgmr.msra.gmra.mxu1 %v123_v32 }
 0x197   :  { %v320_v34 = vpop.f32.mrf.mxu1 }
 0x198   :  { %v219_v35 = vadd.f32 %v320_v34, %v244_v33 }
 0x199   :  { %v213_v36 = vpop.f32.mrf.mxu1 }
 0x19a   :  { %224 = vst.msk [vmem:[#allocation2 + $0x8] sm:$0xff] %vm222_vm3, %v219_v35  ;;  %v214_v37 = vadd.f32 %v244_v33, %v213_v36 }
 0x19c   :  { %223 = vst.msk [vmem:[#allocation2] sm:$0xff] %vm222_vm3, %v214_v37 }
 0x19d   :  { %229 = vsyncadd [#allocation3], 128  ;;  %s346_s2 = smov [#allocation2]  }
 0x19e   :  { %s230_s17 = sshll.u32 %s346_s2, 4  ;;  %s231_s17 = int_to_ptr.vmem [resolvable:$true] %s230_s17 }
 0x19f   :  { %s324_s18 = scalar_lea.vmem %s231_s17, 128  ;;  %s328_s19 = scalar_lea.vmem %s231_s17, 256 }
 0x1a0   :  { %p325_p0 = scmp.ne.s32.totalorder %s231_s17, %s324_s18  ;;  %p329_p1 = scmp.lt.s32.totalorder %s231_s17, %s231_s17 }
 0x1a1   :  { %p330_p2 = scmp.lt.s32.totalorder %s328_s19, %s324_s18 }
 0x1a3   :  { %p331_p3 = por %p330_p2, %p329_p1 }
 0x1a5   :  { %p332_p4 = pnand %p331_p3, %p325_p0 }
 0x1a7   :  { %335 = shalt.err (!%p332_p4)
}
 0x1a8   :  { %s347_s4 = smov 128   ;;  %s348_s20 = smov 8  }
 0x1a9   :  { %236 = dma.vmem_to_hbm [thread:$0]  %s231_s17, 128, %s467_s5, [#allocation3], %s347_s4, %s347_s4, %s348_s20  }
 0x1aa   :  { %344 = dma.done.wait [#allocation3], 256  }
 0x1ab   :  { %345 = vsyncadd [#allocation3], 4294967040 }
 0x1ac   :  { %240 = vsyncpa [#allocation3], 1 }

</bundles_post_ra>
